<compile_context>
chip_gen: v6e
topology: v6e:2x2x1
jax: 0.10.0
libtpu: 0.0.40
codegen_flags: <defaults>
</compile_context>

<pallas_src>
import functools

import jax
import jax.numpy as jnp
from jax import lax
from jax.experimental import pallas as pl
from jax.experimental.pallas import tpu as pltpu


# ------------------------------------------------------------------ grid setup ----
def generate_grid(grid_confs):
    """Standard BEV-style grid helper: (lower_bound, interval, size) per dim."""
    lower_bound = jnp.array([c[0] + c[2] / 2.0 for c in grid_confs], jnp.float32)
    interval = jnp.array([c[2] for c in grid_confs], jnp.float32)
    size = jnp.array([int((c[1] - c[0]) / c[2]) for c in grid_confs], jnp.int32)
    return lower_bound, interval, size


def build_mesh_grid(input_grid_conf, target_grid_conf):
    """Replicates GridSampler.__init__ (returns mesh_grid of shape (H_out, W_out, 2))."""
    target_lower_bound, target_interval, _ = generate_grid(
        [target_grid_conf["xbound"], target_grid_conf["ybound"]]
    )
    mesh_x = jnp.arange(
        float(target_lower_bound[0]), target_grid_conf["xbound"][1],
        float(target_interval[0]), dtype=jnp.float32,
    )
    mesh_y = jnp.arange(
        float(target_lower_bound[1]), target_grid_conf["ybound"][1],
        float(target_interval[1]), dtype=jnp.float32,
    )
    ix_lo, ix_hi = input_grid_conf["xbound"][0], input_grid_conf["xbound"][1]
    iy_lo, iy_hi = input_grid_conf["ybound"][0], input_grid_conf["ybound"][1]
    norm_mesh_x = (mesh_x - ix_lo) / (ix_hi - ix_lo) * 2.0 - 1.0
    norm_mesh_y = (mesh_y - iy_lo) / (iy_hi - iy_lo) * 2.0 - 1.0
    # torch.meshgrid(-nx, -ny, indexing='ij') then stack(dim=2): (H_out, W_out, 2)
    gx = jnp.broadcast_to((-norm_mesh_x)[:, None], (mesh_x.shape[0], mesh_y.shape[0]))
    gy = jnp.broadcast_to((-norm_mesh_y)[None, :], (mesh_x.shape[0], mesh_y.shape[0]))
    return jnp.stack([gx, gy], axis=2)


# ------------------------------------------------ separable bilinear weights ------
def _bilinear_weight_matrix(g, size):
    """Bilinear sampling weights for a 1-D set of normalized coords.

    g: (M,) normalized coordinates in [-1, 1] (align_corners=True convention).
    size: input extent along the sampled axis.
    Returns (M, size) f32 weight matrix (<=2 nonzeros per row, zeros padding).
    """
    g = g.astype(jnp.float32)
    pos = (g + 1.0) * 0.5 * (size - 1)          # align_corners=True un-normalization
    i0 = jnp.floor(pos)
    i1 = i0 + 1.0
    w1 = pos - i0
    w0 = 1.0 - w1
    cols = jnp.arange(size, dtype=jnp.float32)[None, :]          # (1, size)

    def onehot(idx, w):
        valid = (idx >= 0.0) & (idx <= size - 1.0)               # zeros padding mode
        idx_c = jnp.clip(idx, 0.0, size - 1.0)
        wv = jnp.where(valid, w, 0.0)
        return jnp.where(cols == idx_c[:, None], wv[:, None], 0.0)

    return onehot(i0, w0) + onehot(i1, w1)                       # (M, size)


# --------------------------------------------------------------------- kernel -----
def grid_sample_kernel(ax_ref, ay_ref, x_ref, o_ref, *, block_nc):
    # ax_ref: (H_out, W_in)  bilinear weights along width  (row-dependent x coord)
    # ay_ref: (W_out, H_in)  bilinear weights along height (col-dependent y coord)
    # x_ref : (block_nc, H_in, W_in)
    # o_ref : (block_nc, H_out, W_out)
    ax = ax_ref[...]
    ay = ay_ref[...]
    for c in range(block_nc):                                    # static unroll
        xc = x_ref[c]                                            # (H_in, W_in)
        # t[j, w] = sum_h ay[j, h] * x[h, w]
        t = jnp.dot(ay, xc, preferred_element_type=jnp.float32)  # (W_out, W_in)
        # out[i, j] = sum_w ax[i, w] * t[j, w]   (trans_b contraction, MXU)
        oc = lax.dot_general(
            ax, t, (((1,), (1,)), ((), ())),
            preferred_element_type=jnp.float32,
        )                                                        # (H_out, W_out)
        o_ref[c] = oc.astype(o_ref.dtype)


# -------------------------------------------------------------------- wrapper -----
def grid_sampler_forward(x, mesh_grid, *, block_nc=8):
    """x: (N, C, H_in, W_in) f32; mesh_grid: (H_out, W_out, 2) separable BEV grid.

    Requires the GridSampler-style axis-separable grid (x-coord constant along
    columns, y-coord constant along rows), which build_mesh_grid guarantees.
    """
    # TODO(synk): add a tiled one-hot (P_out x P_in) fallback path for non-separable grids.
    N, C, H_in, W_in = x.shape
    H_out, W_out, _ = mesh_grid.shape
    NC = N * C

    # Separable 1-D normalized coordinates.
    gx_1d = mesh_grid[:, 0, 0]          # (H_out,) x-coord -> indexes W_in
    gy_1d = mesh_grid[0, :, 1]          # (W_out,) y-coord -> indexes H_in

    ax = _bilinear_weight_matrix(gx_1d, W_in)   # (H_out, W_in)
    ay = _bilinear_weight_matrix(gy_1d, H_in)   # (W_out, H_in)

    block_nc = max(1, min(block_nc, NC))
    nc_pad = ((NC + block_nc - 1) // block_nc) * block_nc
    x_flat = x.reshape(NC, H_in, W_in).astype(jnp.float32)
    if nc_pad != NC:
        x_flat = jnp.pad(x_flat, ((0, nc_pad - NC), (0, 0), (0, 0)))

    kernel = functools.partial(grid_sample_kernel, block_nc=block_nc)

    flops = 2 * nc_pad * (W_out * H_in * W_in + H_out * W_out * W_in)
    bytes_accessed = 4 * (
        nc_pad * (H_in * W_in + H_out * W_out) + H_out * W_in + W_out * H_in
    )

    out_flat = pl.pallas_call(
        kernel,
        out_shape=jax.ShapeDtypeStruct((nc_pad, H_out, W_out), jnp.float32),
        grid=(nc_pad // block_nc,),
        in_specs=[
            pl.BlockSpec((H_out, W_in), lambda i: (0, 0)),
            pl.BlockSpec((W_out, H_in), lambda i: (0, 0)),
            pl.BlockSpec((block_nc, H_in, W_in), lambda i: (i, 0, 0)),
        ],
        out_specs=pl.BlockSpec((block_nc, H_out, W_out), lambda i: (i, 0, 0)),
        compiler_params=pltpu.CompilerParams(
            dimension_semantics=("parallel",),
        ),
        cost_estimate=pl.CostEstimate(
            flops=flops, transcendentals=0, bytes_accessed=bytes_accessed
        ),
    )(ax, ay, x_flat)

    return out_flat[:NC].reshape(N, C, H_out, W_out)


# ---------------------------------------------------------- pure-JAX reference ----
def grid_sample_ref(x, mesh_grid):
    """Plain-JAX bilinear grid_sample (align_corners=True, zeros padding)."""
    N, C, H_in, W_in = x.shape
    gx = mesh_grid[..., 0]
    gy = mesh_grid[..., 1]
    ix = (gx + 1.0) * 0.5 * (W_in - 1)
    iy = (gy + 1.0) * 0.5 * (H_in - 1)
    x0 = jnp.floor(ix); x1 = x0 + 1.0
    y0 = jnp.floor(iy); y1 = y0 + 1.0
    wx1 = ix - x0; wx0 = 1.0 - wx1
    wy1 = iy - y0; wy0 = 1.0 - wy1

    def gather(xc, yc, w):
        valid = (xc >= 0) & (xc <= W_in - 1) & (yc >= 0) & (yc <= H_in - 1)
        xcl = jnp.clip(xc, 0, W_in - 1).astype(jnp.int32)
        ycl = jnp.clip(yc, 0, H_in - 1).astype(jnp.int32)
        vals = x[:, :, ycl, xcl]                      # (N, C, H_out, W_out)
        return vals * (w * valid)[None, None]

    return (gather(x0, y0, wx0 * wy0) + gather(x1, y0, wx1 * wy0)
            + gather(x0, y1, wx0 * wy1) + gather(x1, y1, wx1 * wy1))


# ----------------------------------------------------------------------- main -----
if __name__ == "__main__":
    input_grid_conf = {"xbound": [-8.0, 8.0, 1.0], "ybound": [-8.0, 8.0, 1.0]}
    target_grid_conf = {"xbound": [-8.0, 8.0, 1.0], "ybound": [-8.0, 8.0, 1.0]}

    mesh_grid = build_mesh_grid(input_grid_conf, target_grid_conf)

    # Sanity: the GridSampler grid is axis-separable (required by the kernel path).
    assert bool(jnp.all(mesh_grid[..., 0] == mesh_grid[:, :1, 0]))
    assert bool(jnp.all(mesh_grid[..., 1] == mesh_grid[:1, :, 1]))

    key = jax.random.PRNGKey(0)
    x = jax.random.normal(key, (2, 4, 16, 16), dtype=jnp.float32)

    out = grid_sampler_forward(x, mesh_grid)
    out = jax.block_until_ready(out)

    ref = grid_sample_ref(x, mesh_grid)
    assert out.shape == (2, 4, mesh_grid.shape[0], mesh_grid.shape[1])
    assert jnp.allclose(out, ref, atol=1e-5, rtol=1e-5)

    print("KERNEL_OK")
</pallas_src>

<mosaic_0001>
module attributes {stable_mosaic.version = 11 : i64} {
  func.func @grid_sample_kernel(%arg0: i32, %arg1: memref<16x16xf32, #tpu.memory_space<vmem>>, %arg2: memref<16x16xf32, #tpu.memory_space<vmem>>, %arg3: memref<8x16x16xf32, #tpu.memory_space<vmem>>, %arg4: memref<8x16x16xf32, #tpu.memory_space<vmem>>) attributes {dimension_semantics = [#tpu.dimension_semantics<parallel>], iteration_bounds = array<i64: 1>, scalar_prefetch = 0 : i64, scratch_operands = 0 : i64, tpu.core_type = #tpu.core_type<tc>, window_params = [{pipeline_mode = #tpu.pipeline_mode<synchronous>, transform_indices = @transform_0, window_bounds = array<i64: 16, 16>}, {pipeline_mode = #tpu.pipeline_mode<synchronous>, transform_indices = @transform_1, window_bounds = array<i64: 16, 16>}, {transform_indices = @transform_2, window_bounds = array<i64: 8, 16, 16>}, {transform_indices = @transform_3, window_bounds = array<i64: 8, 16, 16>}]} {
    %c0 = arith.constant 0 : index
    %c0_0 = arith.constant 0 : index
    %0 = vector.load %arg1[%c0, %c0_0] : memref<16x16xf32, #tpu.memory_space<vmem>>, vector<16x16xf32>
    %c0_1 = arith.constant 0 : index
    %c0_2 = arith.constant 0 : index
    %1 = vector.load %arg2[%c0_1, %c0_2] : memref<16x16xf32, #tpu.memory_space<vmem>>, vector<16x16xf32>
    %c0_3 = arith.constant 0 : index
    %c0_4 = arith.constant 0 : index
    %c0_5 = arith.constant 0 : index
    %2 = vector.load %arg3[%c0_3, %c0_4, %c0_5] : memref<8x16x16xf32, #tpu.memory_space<vmem>>, vector<1x16x16xf32>
    %3 = vector.shape_cast %2 : vector<1x16x16xf32> to vector<16x16xf32>
    %cst = arith.constant dense<0.000000e+00> : vector<16x16xf32>
    %4 = tpu.matmul %1, %3, %cst {dimension_numbers = #tpu.dot_dimension_numbers<[1], [0], [0], [1], [0, 0, 1, 1], [], []>} : vector<16x16xf32>, vector<16x16xf32>, vector<16x16xf32> -> vector<16x16xf32>
    %cst_6 = arith.constant dense<0.000000e+00> : vector<16x16xf32>
    %5 = tpu.matmul %0, %4, %cst_6 {dimension_numbers = #tpu.dot_dimension_numbers<[1], [1], [0], [0], [0, 0, 1, 0], [], []>} : vector<16x16xf32>, vector<16x16xf32>, vector<16x16xf32> -> vector<16x16xf32>
    %c0_7 = arith.constant 0 : index
    %c0_8 = arith.constant 0 : index
    %c0_9 = arith.constant 0 : index
    %6 = vector.load %arg4[%c0_7, %c0_8, %c0_9] : memref<8x16x16xf32, #tpu.memory_space<vmem>>, vector<1x16x16xf32>
    %7 = vector.shape_cast %6 : vector<1x16x16xf32> to vector<16x16xf32>
    %8 = vector.shape_cast %5 : vector<16x16xf32> to vector<1x16x16xf32>
    tpu.vector_store %arg4[%c0_7, %c0_8, %c0_9], %8 {strides = array<i32>} : memref<8x16x16xf32, #tpu.memory_space<vmem>>, vector<1x16x16xf32>,
    %c1 = arith.constant 1 : index
    %c0_10 = arith.constant 0 : index
    %c0_11 = arith.constant 0 : index
    %9 = vector.load %arg3[%c1, %c0_10, %c0_11] : memref<8x16x16xf32, #tpu.memory_space<vmem>>, vector<1x16x16xf32>
    %10 = vector.shape_cast %9 : vector<1x16x16xf32> to vector<16x16xf32>
    %cst_12 = arith.constant dense<0.000000e+00> : vector<16x16xf32>
    %11 = tpu.matmul %1, %10, %cst_12 {dimension_numbers = #tpu.dot_dimension_numbers<[1], [0], [0], [1], [0, 0, 1, 1], [], []>} : vector<16x16xf32>, vector<16x16xf32>, vector<16x16xf32> -> vector<16x16xf32>
    %cst_13 = arith.constant dense<0.000000e+00> : vector<16x16xf32>
    %12 = tpu.matmul %0, %11, %cst_13 {dimension_numbers = #tpu.dot_dimension_numbers<[1], [1], [0], [0], [0, 0, 1, 0], [], []>} : vector<16x16xf32>, vector<16x16xf32>, vector<16x16xf32> -> vector<16x16xf32>
    %c1_14 = arith.constant 1 : index
    %c0_15 = arith.constant 0 : index
    %c0_16 = arith.constant 0 : index
    %13 = vector.load %arg4[%c1_14, %c0_15, %c0_16] : memref<8x16x16xf32, #tpu.memory_space<vmem>>, vector<1x16x16xf32>
    %14 = vector.shape_cast %13 : vector<1x16x16xf32> to vector<16x16xf32>
    %15 = vector.shape_cast %12 : vector<16x16xf32> to vector<1x16x16xf32>
    tpu.vector_store %arg4[%c1_14, %c0_15, %c0_16], %15 {strides = array<i32>} : memref<8x16x16xf32, #tpu.memory_space<vmem>>, vector<1x16x16xf32>,
    %c2 = arith.constant 2 : index
    %c0_17 = arith.constant 0 : index
    %c0_18 = arith.constant 0 : index
    %16 = vector.load %arg3[%c2, %c0_17, %c0_18] : memref<8x16x16xf32, #tpu.memory_space<vmem>>, vector<1x16x16xf32>
    %17 = vector.shape_cast %16 : vector<1x16x16xf32> to vector<16x16xf32>
    %cst_19 = arith.constant dense<0.000000e+00> : vector<16x16xf32>
    %18 = tpu.matmul %1, %17, %cst_19 {dimension_numbers = #tpu.dot_dimension_numbers<[1], [0], [0], [1], [0, 0, 1, 1], [], []>} : vector<16x16xf32>, vector<16x16xf32>, vector<16x16xf32> -> vector<16x16xf32>
    %cst_20 = arith.constant dense<0.000000e+00> : vector<16x16xf32>
    %19 = tpu.matmul %0, %18, %cst_20 {dimension_numbers = #tpu.dot_dimension_numbers<[1], [1], [0], [0], [0, 0, 1, 0], [], []>} : vector<16x16xf32>, vector<16x16xf32>, vector<16x16xf32> -> vector<16x16xf32>
    %c2_21 = arith.constant 2 : index
    %c0_22 = arith.constant 0 : index
    %c0_23 = arith.constant 0 : index
    %20 = vector.load %arg4[%c2_21, %c0_22, %c0_23] : memref<8x16x16xf32, #tpu.memory_space<vmem>>, vector<1x16x16xf32>
    %21 = vector.shape_cast %20 : vector<1x16x16xf32> to vector<16x16xf32>
    %22 = vector.shape_cast %19 : vector<16x16xf32> to vector<1x16x16xf32>
    tpu.vector_store %arg4[%c2_21, %c0_22, %c0_23], %22 {strides = array<i32>} : memref<8x16x16xf32, #tpu.memory_space<vmem>>, vector<1x16x16xf32>,
    %c3 = arith.constant 3 : index
    %c0_24 = arith.constant 0 : index
    %c0_25 = arith.constant 0 : index
    %23 = vector.load %arg3[%c3, %c0_24, %c0_25] : memref<8x16x16xf32, #tpu.memory_space<vmem>>, vector<1x16x16xf32>
    %24 = vector.shape_cast %23 : vector<1x16x16xf32> to vector<16x16xf32>
    %cst_26 = arith.constant dense<0.000000e+00> : vector<16x16xf32>
    %25 = tpu.matmul %1, %24, %cst_26 {dimension_numbers = #tpu.dot_dimension_numbers<[1], [0], [0], [1], [0, 0, 1, 1], [], []>} : vector<16x16xf32>, vector<16x16xf32>, vector<16x16xf32> -> vector<16x16xf32>
    %cst_27 = arith.constant dense<0.000000e+00> : vector<16x16xf32>
    %26 = tpu.matmul %0, %25, %cst_27 {dimension_numbers = #tpu.dot_dimension_numbers<[1], [1], [0], [0], [0, 0, 1, 0], [], []>} : vector<16x16xf32>, vector<16x16xf32>, vector<16x16xf32> -> vector<16x16xf32>
    %c3_28 = arith.constant 3 : index
    %c0_29 = arith.constant 0 : index
    %c0_30 = arith.constant 0 : index
    %27 = vector.load %arg4[%c3_28, %c0_29, %c0_30] : memref<8x16x16xf32, #tpu.memory_space<vmem>>, vector<1x16x16xf32>
    %28 = vector.shape_cast %27 : vector<1x16x16xf32> to vector<16x16xf32>
    %29 = vector.shape_cast %26 : vector<16x16xf32> to vector<1x16x16xf32>
    tpu.vector_store %arg4[%c3_28, %c0_29, %c0_30], %29 {strides = array<i32>} : memref<8x16x16xf32, #tpu.memory_space<vmem>>, vector<1x16x16xf32>,
    %c4 = arith.constant 4 : index
    %c0_31 = arith.constant 0 : index
    %c0_32 = arith.constant 0 : index
    %30 = vector.load %arg3[%c4, %c0_31, %c0_32] : memref<8x16x16xf32, #tpu.memory_space<vmem>>, vector<1x16x16xf32>
    %31 = vector.shape_cast %30 : vector<1x16x16xf32> to vector<16x16xf32>
    %cst_33 = arith.constant dense<0.000000e+00> : vector<16x16xf32>
    %32 = tpu.matmul %1, %31, %cst_33 {dimension_numbers = #tpu.dot_dimension_numbers<[1], [0], [0], [1], [0, 0, 1, 1], [], []>} : vector<16x16xf32>, vector<16x16xf32>, vector<16x16xf32> -> vector<16x16xf32>
    %cst_34 = arith.constant dense<0.000000e+00> : vector<16x16xf32>
    %33 = tpu.matmul %0, %32, %cst_34 {dimension_numbers = #tpu.dot_dimension_numbers<[1], [1], [0], [0], [0, 0, 1, 0], [], []>} : vector<16x16xf32>, vector<16x16xf32>, vector<16x16xf32> -> vector<16x16xf32>
    %c4_35 = arith.constant 4 : index
    %c0_36 = arith.constant 0 : index
    %c0_37 = arith.constant 0 : index
    %34 = vector.load %arg4[%c4_35, %c0_36, %c0_37] : memref<8x16x16xf32, #tpu.memory_space<vmem>>, vector<1x16x16xf32>
    %35 = vector.shape_cast %34 : vector<1x16x16xf32> to vector<16x16xf32>
    %36 = vector.shape_cast %33 : vector<16x16xf32> to vector<1x16x16xf32>
    tpu.vector_store %arg4[%c4_35, %c0_36, %c0_37], %36 {strides = array<i32>} : memref<8x16x16xf32, #tpu.memory_space<vmem>>, vector<1x16x16xf32>,
    %c5 = arith.constant 5 : index
    %c0_38 = arith.constant 0 : index
    %c0_39 = arith.constant 0 : index
    %37 = vector.load %arg3[%c5, %c0_38, %c0_39] : memref<8x16x16xf32, #tpu.memory_space<vmem>>, vector<1x16x16xf32>
    %38 = vector.shape_cast %37 : vector<1x16x16xf32> to vector<16x16xf32>
    %cst_40 = arith.constant dense<0.000000e+00> : vector<16x16xf32>
    %39 = tpu.matmul %1, %38, %cst_40 {dimension_numbers = #tpu.dot_dimension_numbers<[1], [0], [0], [1], [0, 0, 1, 1], [], []>} : vector<16x16xf32>, vector<16x16xf32>, vector<16x16xf32> -> vector<16x16xf32>
    %cst_41 = arith.constant dense<0.000000e+00> : vector<16x16xf32>
    %40 = tpu.matmul %0, %39, %cst_41 {dimension_numbers = #tpu.dot_dimension_numbers<[1], [1], [0], [0], [0, 0, 1, 0], [], []>} : vector<16x16xf32>, vector<16x16xf32>, vector<16x16xf32> -> vector<16x16xf32>
    %c5_42 = arith.constant 5 : index
    %c0_43 = arith.constant 0 : index
    %c0_44 = arith.constant 0 : index
    %41 = vector.load %arg4[%c5_42, %c0_43, %c0_44] : memref<8x16x16xf32, #tpu.memory_space<vmem>>, vector<1x16x16xf32>
    %42 = vector.shape_cast %41 : vector<1x16x16xf32> to vector<16x16xf32>
    %43 = vector.shape_cast %40 : vector<16x16xf32> to vector<1x16x16xf32>
    tpu.vector_store %arg4[%c5_42, %c0_43, %c0_44], %43 {strides = array<i32>} : memref<8x16x16xf32, #tpu.memory_space<vmem>>, vector<1x16x16xf32>,
    %c6 = arith.constant 6 : index
    %c0_45 = arith.constant 0 : index
    %c0_46 = arith.constant 0 : index
    %44 = vector.load %arg3[%c6, %c0_45, %c0_46] : memref<8x16x16xf32, #tpu.memory_space<vmem>>, vector<1x16x16xf32>
    %45 = vector.shape_cast %44 : vector<1x16x16xf32> to vector<16x16xf32>
    %cst_47 = arith.constant dense<0.000000e+00> : vector<16x16xf32>
    %46 = tpu.matmul %1, %45, %cst_47 {dimension_numbers = #tpu.dot_dimension_numbers<[1], [0], [0], [1], [0, 0, 1, 1], [], []>} : vector<16x16xf32>, vector<16x16xf32>, vector<16x16xf32> -> vector<16x16xf32>
    %cst_48 = arith.constant dense<0.000000e+00> : vector<16x16xf32>
    %47 = tpu.matmul %0, %46, %cst_48 {dimension_numbers = #tpu.dot_dimension_numbers<[1], [1], [0], [0], [0, 0, 1, 0], [], []>} : vector<16x16xf32>, vector<16x16xf32>, vector<16x16xf32> -> vector<16x16xf32>
    %c6_49 = arith.constant 6 : index
    %c0_50 = arith.constant 0 : index
    %c0_51 = arith.constant 0 : index
    %48 = vector.load %arg4[%c6_49, %c0_50, %c0_51] : memref<8x16x16xf32, #tpu.memory_space<vmem>>, vector<1x16x16xf32>
    %49 = vector.shape_cast %48 : vector<1x16x16xf32> to vector<16x16xf32>
    %50 = vector.shape_cast %47 : vector<16x16xf32> to vector<1x16x16xf32>
    tpu.vector_store %arg4[%c6_49, %c0_50, %c0_51], %50 {strides = array<i32>} : memref<8x16x16xf32, #tpu.memory_space<vmem>>, vector<1x16x16xf32>,
    %c7 = arith.constant 7 : index
    %c0_52 = arith.constant 0 : index
    %c0_53 = arith.constant 0 : index
    %51 = vector.load %arg3[%c7, %c0_52, %c0_53] : memref<8x16x16xf32, #tpu.memory_space<vmem>>, vector<1x16x16xf32>
    %52 = vector.shape_cast %51 : vector<1x16x16xf32> to vector<16x16xf32>
    %cst_54 = arith.constant dense<0.000000e+00> : vector<16x16xf32>
    %53 = tpu.matmul %1, %52, %cst_54 {dimension_numbers = #tpu.dot_dimension_numbers<[1], [0], [0], [1], [0, 0, 1, 1], [], []>} : vector<16x16xf32>, vector<16x16xf32>, vector<16x16xf32> -> vector<16x16xf32>
    %cst_55 = arith.constant dense<0.000000e+00> : vector<16x16xf32>
    %54 = tpu.matmul %0, %53, %cst_55 {dimension_numbers = #tpu.dot_dimension_numbers<[1], [1], [0], [0], [0, 0, 1, 0], [], []>} : vector<16x16xf32>, vector<16x16xf32>, vector<16x16xf32> -> vector<16x16xf32>
    %c7_56 = arith.constant 7 : index
    %c0_57 = arith.constant 0 : index
    %c0_58 = arith.constant 0 : index
    %55 = vector.load %arg4[%c7_56, %c0_57, %c0_58] : memref<8x16x16xf32, #tpu.memory_space<vmem>>, vector<1x16x16xf32>
    %56 = vector.shape_cast %55 : vector<1x16x16xf32> to vector<16x16xf32>
    %57 = vector.shape_cast %54 : vector<16x16xf32> to vector<1x16x16xf32>
    tpu.vector_store %arg4[%c7_56, %c0_57, %c0_58], %57 {strides = array<i32>} : memref<8x16x16xf32, #tpu.memory_space<vmem>>, vector<1x16x16xf32>,
    return
  }
  func.func @transform_0(%arg0: i32) -> (i32, i32) {
    %c0_i32 = arith.constant 0 : i32
    %c0_i32_0 = arith.constant 0 : i32
    %c0_i32_1 = arith.constant 0 : i32
    return %c0_i32, %c0_i32_0 : i32, i32
  }
  func.func @transform_1(%arg0: i32) -> (i32, i32) {
    %c0_i32 = arith.constant 0 : i32
    %c0_i32_0 = arith.constant 0 : i32
    %c0_i32_1 = arith.constant 0 : i32
    return %c0_i32, %c0_i32_0 : i32, i32
  }
  func.func @transform_2(%arg0: i32) -> (i32, i32, i32) {
    %c0_i32 = arith.constant 0 : i32
    %c0_i32_0 = arith.constant 0 : i32
    %c0_i32_1 = arith.constant 0 : i32
    return %arg0, %c0_i32, %c0_i32_0 : i32, i32, i32
  }
  func.func @transform_3(%arg0: i32) -> (i32, i32, i32) {
    %c0_i32 = arith.constant 0 : i32
    %c0_i32_0 = arith.constant 0 : i32
    %c0_i32_1 = arith.constant 0 : i32
    return %arg0, %c0_i32, %c0_i32_0 : i32, i32, i32
  }
}

</mosaic_0001>

<bundles_post_ra>
// kernel: tpu_custom_call.1
= control target key start
LH: loop header
LB: loop body
LE: loop exit
PB: predicated region body
PF: predicated region fallthrough
CT: control target
= control target key end

     0   :  { %8 = vsyncpa [#allocation3], 0  ;;  %s1871_s0 = inlined_call_operand.hbm [shape: f32[16,16], index: 0, kind: input, shape index: {}]   ;;  %s1872_s1 = inlined_call_operand.hbm [shape: f32[16,16], index: 1, kind: input, shape index: {}]   ;;  %s1873_s2 = inlined_call_operand.hbm [shape: f32[8,16,16], index: 2, kind: input, shape index: {}]   ;;  %s1874_s3 = inlined_call_operand.hbm [shape: f32[8,16,16], index: 3, kind: output, shape index: {}]  }
   0x1   :  { %9 = vsyncpa [#allocation6], 0 }
   0x2   :  { %10 = vsyncpa [#allocation4], 0  ;;  %s1701_s12 = smov [#allocation5]   ;;  %s1702_s14 = smov [#allocation2]  }
   0x3   :  { %s28_s13 = sshll.u32 %s1701_s12, 4  ;;  %s16_s15 = sshll.u32 %s1702_s14, 4  ;;  %s29_s13 = int_to_ptr.vmem [resolvable:$true] %s28_s13  ;;  %s17_s15 = int_to_ptr.vmem [resolvable:$true] %s16_s15 }
   0x4   :  { %s1623_s16 = scalar_lea.vmem %s29_s13, 256  ;;  %p1628_p1 = scmp.lt.s32.totalorder %s29_s13, %s29_s13 }
   0x5   :  { %p1624_p0 = scmp.ne.s32.totalorder %s29_s13, %s1623_s16  ;;  %p1629_p2 = scmp.lt.s32.totalorder %s1623_s16, %s1623_s16 }
   0x7   :  { %p1630_p3 = por %p1629_p2, %p1628_p1 }
   0x9   :  { %p1631_p4 = pnand %p1630_p3, %p1624_p0 }
   0xb   :  { %1634 = shalt.err (!%p1631_p4)
}
   0xc   :  { %s1703_s17 = smov 128   ;;  %s1704_s18 = smov 8  }
   0xd   :  { %34 = dma.hbm_to_vmem [thread:$0]  %s1872_s1, 256, %s29_s13, [#allocation6], %s1703_s17, %s1703_s17, %s1704_s18  }
   0xe   :  { %s1643_s21 = scalar_lea.vmem %s17_s15, 256  ;;  %p1648_p6 = scmp.lt.s32.totalorder %s17_s15, %s17_s15 }
   0xf   :  { %p1644_p5 = scmp.ne.s32.totalorder %s17_s15, %s1643_s21  ;;  %p1649_p7 = scmp.lt.s32.totalorder %s1643_s21, %s1643_s21 }
  0x11   :  { %p1650_p8 = por %p1649_p7, %p1648_p6 }
  0x13   :  { %p1651_p9 = pnand %p1650_p8, %p1644_p5 }
  0x15   :  { %1654 = shalt.err (!%p1651_p9)
}
  0x16   :  { %22 = dma.hbm_to_vmem [thread:$0]  %s1871_s0, 256, %s17_s15, [#allocation3], %s1703_s17, %s1703_s17, %s1704_s18  }
  0x17   :  { %s1705_s24 = smov [#allocation7]  }
  0x18   :  { %s40_s25 = sshll.u32 %s1705_s24, 4  ;;  %s41_s25 = int_to_ptr.vmem [resolvable:$true] %s40_s25 }
  0x19   :  { %s1663_s26 = scalar_lea.vmem %s41_s25, 2048  ;;  %p1668_p11 = scmp.lt.s32.totalorder %s41_s25, %s41_s25 }
  0x1a   :  { %p1664_p10 = scmp.ne.s32.totalorder %s41_s25, %s1663_s26  ;;  %p1669_p12 = scmp.lt.s32.totalorder %s1663_s26, %s1663_s26 }
  0x1c   :  { %p1670_p13 = por %p1669_p12, %p1668_p11 }
  0x1e   :  { %p1671_p0 = pnand %p1670_p13, %p1664_p10 }
  0x20   :  { %1674 = shalt.err (!%p1671_p0)
}
  0x21   :  { %46 = dma.hbm_to_vmem [thread:$0]  %s1873_s2, 2048, %s41_s25, [#allocation6], %s1703_s17, %s1703_s17, %s1704_s18  }
  0x22   :  { %1695 = dma.done.wait [#allocation3], 256  }
  0x23   :  { %1696 = vsyncadd [#allocation3], 4294967040 }
  0x24   :  { %1697 = dma.done.wait [#allocation6], 2304  }
  0x25   :  { %1698 = vsyncadd [#allocation6], 4294964992  ;;  %v61_v0 = vld [vmem:[#allocation7 + $0x8] sm:$0xff]  ;;  %v235_v1 = vld [vmem:[#allocation7 + $0x18] sm:$0xff]  ;;  %vm62_vm0 = vcmask 130048   ;;  %s1706_s0 = smov [#allocation8]  }
  0x26   :  { %v60_v2 = vld [vmem:[#allocation7] sm:$0xff]  ;;  %1497 = vmatprep.subr.mxu1 %v61_v0  ;;  %1511 = vmatprep.subr.mxu0 %v235_v1  ;;  %v234_v3 = vld [vmem:[#allocation7 + $0x10] sm:$0xff]  ;;  %v1747_v5 = vld [vmem:[#allocation5 + $0x8] sm:$0xff]  ;;  %s1372_s2 = sshll.u32 %s1706_s0, 4  ;;  %s1373_s2 = int_to_ptr.vmem [resolvable:$true] %s1372_s2 }
  0x27   :  { %v1745_v4 = vld [vmem:[#allocation5] sm:$0xff]  ;;  %1498 = vmatpush3.msra.mxu1 %v61_v0  ;;  %1512 = vmatpush3.msra.mxu0 %v235_v1  ;;  %v1757_v6 = vld [vmem:[#allocation2] sm:$0xff]  ;;  %v397_v11 = vld [vmem:[#allocation7 + $0x28] sm:$0xff]  ;;  %s1675_s28 = scalar_lea.vmem %s1373_s2, 2048  ;;  %p1680_p2 = scmp.lt.s32.totalorder %s1373_s2, %s1373_s2 }
  0x28   :  { %1499 = vmatprep.subr.mxu1 %v60_v2  ;;  %1513 = vmatprep.subr.mxu0 %v234_v3  ;;  %v559_v12 = vld [vmem:[#allocation7 + $0x38] sm:$0xff]  ;;  %v1771_v13 = vld [vmem:[#allocation2 + $0x8] sm:$0xff]  ;;  %v396_v14 = vld [vmem:[#allocation7 + $0x20] sm:$0xff]  ;;  %p1676_p1 = scmp.ne.s32.totalorder %s1373_s2, %s1675_s28  ;;  %p1681_p3 = scmp.lt.s32.totalorder %s1675_s28, %s1675_s28 }
  0x29   :  { %1500 = vmatpush3.msra.mxu1 %v60_v2  ;;  %1501 = vmatprep.mubr.msk.f32.mxu1 %vm62_vm0, %v1745_v4  ;;  %v558_v15 = vld [vmem:[#allocation7 + $0x30] sm:$0xff]  ;;  %v721_v24 = vld [vmem:[#allocation7 + $0x48] sm:$0xff]  ;;  %v883_v25 = vld [vmem:[#allocation7 + $0x58] sm:$0xff] }
  0x2a   :  { %1514 = vmatpush3.msra.mxu0 %v234_v3  ;;  %1515 = vmatprep.mubr.msk.f32.mxu0 %vm62_vm0, %v1745_v4  ;;  %v720_v26 = vld [vmem:[#allocation7 + $0x40] sm:$0xff]  ;;  %v882_v27 = vld [vmem:[#allocation7 + $0x50] sm:$0xff]  ;;  %v1045_v36 = vld [vmem:[#allocation7 + $0x68] sm:$0xff]  ;;  %p1682_p4 = por %p1681_p3, %p1680_p2 }
  0x2b   :  { %1502 = vmatmul.mubr.msk.f32.vlgmr.msra.gmra.mxu1 %vm62_vm0, %v1747_v5  ;;  %1516 = vmatmul.mubr.msk.f32.vlgmr.msra.gmra.mxu0 %vm62_vm0, %v1747_v5  ;;  %v1207_v37 = vld [vmem:[#allocation7 + $0x78] sm:$0xff]  ;;  %v1044_v38 = vld [vmem:[#allocation7 + $0x60] sm:$0xff]  ;;  %v1206_v39 = vld [vmem:[#allocation7 + $0x70] sm:$0xff] }
  0x2c   :  { %1508 = vmatprep.mubr.msk.f32.mxu1 %vm62_vm0, %v1757_v6  ;;  %1522 = vmatprep.mubr.msk.f32.mxu0 %vm62_vm0, %v1757_v6  ;;  %p1683_p5 = pnand %p1682_p4, %p1676_p1 }
  0xeb   :  { %v1503_v7 = vpop.f32.mrf.mxu1  ;;  %v1517_v8 = vpop.f32.mrf.mxu0 }
  0xec   :  { %1504 = vmatprep.subr.msk.mxu1 %vm62_vm0, %v1503_v7  ;;  %1518 = vmatprep.subr.msk.mxu0 %vm62_vm0, %v1517_v8 }
  0xed   :  { %v135_v9 = vpop.f32.mrf.mxu1  ;;  %1505 = vmatpush3.xpose.msk.msra.mxu1 %vm62_vm0, %v1503_v7  ;;  %v302_v10 = vpop.f32.mrf.mxu0  ;;  %1519 = vmatpush3.xpose.msk.msra.mxu0 %vm62_vm0, %v1517_v8 }
  0xee   :  { %1506 = vmatprep.subr.msk.mxu1 %vm62_vm0, %v135_v9  ;;  %1520 = vmatprep.subr.msk.mxu0 %vm62_vm0, %v302_v10 }
  0xf1   :  { %1507 = vmatpush3.xpose.msk.msra.mxu1 %vm62_vm0, %v135_v9  ;;  %1521 = vmatpush3.xpose.msk.msra.mxu0 %vm62_vm0, %v302_v10 }
  0xf2   :  { %1525 = vmatprep.subr.mxu1 %v397_v11  ;;  %1539 = vmatprep.subr.mxu0 %v559_v12 }
  0xf4   :  { %1509 = vmatmul.mubr.msk.f32.vlgmr.msra.gmra.mxu1 %vm62_vm0, %v1771_v13  ;;  %1523 = vmatmul.mubr.msk.f32.vlgmr.msra.gmra.mxu0 %vm62_vm0, %v1771_v13 }
  0xf5   :  { %1526 = vmatpush3.msra.mxu1 %v397_v11  ;;  %1540 = vmatpush3.msra.mxu0 %v559_v12 }
  0xf6   :  { %1527 = vmatprep.subr.mxu1 %v396_v14  ;;  %1541 = vmatprep.subr.mxu0 %v558_v15 }
  0xf7   :  { %1528 = vmatpush3.msra.mxu1 %v396_v14  ;;  %1529 = vmatprep.mubr.msk.f32.mxu1 %vm62_vm0, %v1745_v4 }
  0xf8   :  { %1542 = vmatpush3.msra.mxu0 %v558_v15  ;;  %1543 = vmatprep.mubr.msk.f32.mxu0 %vm62_vm0, %v1745_v4 }
  0xf9   :  { %1530 = vmatmul.mubr.msk.f32.vlgmr.msra.gmra.mxu1 %vm62_vm0, %v1747_v5  ;;  %1544 = vmatmul.mubr.msk.f32.vlgmr.msra.gmra.mxu0 %vm62_vm0, %v1747_v5 }
  0xfa   :  { %1536 = vmatprep.mubr.msk.f32.mxu1 %vm62_vm0, %v1757_v6  ;;  %1550 = vmatprep.mubr.msk.f32.mxu0 %vm62_vm0, %v1757_v6 }
 0x1b4   :  { %v1510_v16 = vpop.f32.mrf.mxu1  ;;  %v1524_v17 = vpop.f32.mrf.mxu0 }
 0x1b5   :  { %232 = vst.msk [vmem:[#allocation8 + $0x8] sm:$0xff] %vm62_vm0, %v1510_v16  ;;  %394 = vst.msk [vmem:[#allocation8 + $0x18] sm:$0xff] %vm62_vm0, %v1524_v17 }
 0x1b6   :  { %v222_v18 = vpop.f32.mrf.mxu1  ;;  %v383_v19 = vpop.f32.mrf.mxu0 }
 0x1b7   :  { %231 = vst.msk [vmem:[#allocation8] sm:$0xff] %vm62_vm0, %v222_v18  ;;  %393 = vst.msk [vmem:[#allocation8 + $0x10] sm:$0xff] %vm62_vm0, %v383_v19 }
 0x1b9   :  { %v1531_v20 = vpop.f32.mrf.mxu1  ;;  %v1545_v21 = vpop.f32.mrf.mxu0 }
 0x1ba   :  { %1532 = vmatprep.subr.msk.mxu1 %vm62_vm0, %v1531_v20  ;;  %1546 = vmatprep.subr.msk.mxu0 %vm62_vm0, %v1545_v21 }
 0x1bb   :  { %v464_v22 = vpop.f32.mrf.mxu1  ;;  %1533 = vmatpush3.xpose.msk.msra.mxu1 %vm62_vm0, %v1531_v20  ;;  %v626_v23 = vpop.f32.mrf.mxu0  ;;  %1547 = vmatpush3.xpose.msk.msra.mxu0 %vm62_vm0, %v1545_v21 }
 0x1bc   :  { %1534 = vmatprep.subr.msk.mxu1 %vm62_vm0, %v464_v22  ;;  %1548 = vmatprep.subr.msk.mxu0 %vm62_vm0, %v626_v23 }
 0x1bf   :  { %1535 = vmatpush3.xpose.msk.msra.mxu1 %vm62_vm0, %v464_v22  ;;  %1549 = vmatpush3.xpose.msk.msra.mxu0 %vm62_vm0, %v626_v23 }
 0x1c0   :  { %1553 = vmatprep.subr.mxu1 %v721_v24  ;;  %1567 = vmatprep.subr.mxu0 %v883_v25 }
 0x1c2   :  { %1537 = vmatmul.mubr.msk.f32.vlgmr.msra.gmra.mxu1 %vm62_vm0, %v1771_v13  ;;  %1551 = vmatmul.mubr.msk.f32.vlgmr.msra.gmra.mxu0 %vm62_vm0, %v1771_v13 }
 0x1c3   :  { %1554 = vmatpush3.msra.mxu1 %v721_v24  ;;  %1568 = vmatpush3.msra.mxu0 %v883_v25 }
 0x1c4   :  { %1555 = vmatprep.subr.mxu1 %v720_v26  ;;  %1569 = vmatprep.subr.mxu0 %v882_v27 }
 0x1c5   :  { %1556 = vmatpush3.msra.mxu1 %v720_v26  ;;  %1557 = vmatprep.mubr.msk.f32.mxu1 %vm62_vm0, %v1745_v4 }
 0x1c6   :  { %1570 = vmatpush3.msra.mxu0 %v882_v27  ;;  %1571 = vmatprep.mubr.msk.f32.mxu0 %vm62_vm0, %v1745_v4 }
 0x1c7   :  { %1558 = vmatmul.mubr.msk.f32.vlgmr.msra.gmra.mxu1 %vm62_vm0, %v1747_v5  ;;  %1572 = vmatmul.mubr.msk.f32.vlgmr.msra.gmra.mxu0 %vm62_vm0, %v1747_v5 }
 0x1c8   :  { %1564 = vmatprep.mubr.msk.f32.mxu1 %vm62_vm0, %v1757_v6  ;;  %1578 = vmatprep.mubr.msk.f32.mxu0 %vm62_vm0, %v1757_v6 }
 0x282   :  { %v1538_v28 = vpop.f32.mrf.mxu1  ;;  %v1552_v29 = vpop.f32.mrf.mxu0 }
 0x283   :  { %556 = vst.msk [vmem:[#allocation8 + $0x28] sm:$0xff] %vm62_vm0, %v1538_v28  ;;  %718 = vst.msk [vmem:[#allocation8 + $0x38] sm:$0xff] %vm62_vm0, %v1552_v29 }
 0x284   :  { %v545_v30 = vpop.f32.mrf.mxu1  ;;  %v707_v31 = vpop.f32.mrf.mxu0 }
 0x285   :  { %555 = vst.msk [vmem:[#allocation8 + $0x20] sm:$0xff] %vm62_vm0, %v545_v30  ;;  %717 = vst.msk [vmem:[#allocation8 + $0x30] sm:$0xff] %vm62_vm0, %v707_v31 }
 0x287   :  { %v1559_v32 = vpop.f32.mrf.mxu1  ;;  %v1573_v33 = vpop.f32.mrf.mxu0 }
 0x288   :  { %1560 = vmatprep.subr.msk.mxu1 %vm62_vm0, %v1559_v32  ;;  %1574 = vmatprep.subr.msk.mxu0 %vm62_vm0, %v1573_v33 }
 0x289   :  { %v788_v34 = vpop.f32.mrf.mxu1  ;;  %1561 = vmatpush3.xpose.msk.msra.mxu1 %vm62_vm0, %v1559_v32  ;;  %v950_v35 = vpop.f32.mrf.mxu0  ;;  %1575 = vmatpush3.xpose.msk.msra.mxu0 %vm62_vm0, %v1573_v33 }
 0x28a   :  { %1562 = vmatprep.subr.msk.mxu1 %vm62_vm0, %v788_v34  ;;  %1576 = vmatprep.subr.msk.mxu0 %vm62_vm0, %v950_v35 }
 0x28d   :  { %1563 = vmatpush3.xpose.msk.msra.mxu1 %vm62_vm0, %v788_v34  ;;  %1577 = vmatpush3.xpose.msk.msra.mxu0 %vm62_vm0, %v950_v35 }
 0x28e   :  { %1581 = vmatprep.subr.mxu1 %v1045_v36  ;;  %1595 = vmatprep.subr.mxu0 %v1207_v37 }
 0x290   :  { %1565 = vmatmul.mubr.msk.f32.vlgmr.msra.gmra.mxu1 %vm62_vm0, %v1771_v13  ;;  %1579 = vmatmul.mubr.msk.f32.vlgmr.msra.gmra.mxu0 %vm62_vm0, %v1771_v13 }
 0x291   :  { %1582 = vmatpush3.msra.mxu1 %v1045_v36  ;;  %1596 = vmatpush3.msra.mxu0 %v1207_v37 }
 0x292   :  { %1583 = vmatprep.subr.mxu1 %v1044_v38  ;;  %1597 = vmatprep.subr.mxu0 %v1206_v39 }
 0x293   :  { %1584 = vmatpush3.msra.mxu1 %v1044_v38  ;;  %1585 = vmatprep.mubr.msk.f32.mxu1 %vm62_vm0, %v1745_v4 }
 0x294   :  { %1598 = vmatpush3.msra.mxu0 %v1206_v39  ;;  %1599 = vmatprep.mubr.msk.f32.mxu0 %vm62_vm0, %v1745_v4 }
 0x295   :  { %1586 = vmatmul.mubr.msk.f32.vlgmr.msra.gmra.mxu1 %vm62_vm0, %v1747_v5  ;;  %1600 = vmatmul.mubr.msk.f32.vlgmr.msra.gmra.mxu0 %vm62_vm0, %v1747_v5 }
 0x296   :  { %1592 = vmatprep.mubr.msk.f32.mxu1 %vm62_vm0, %v1757_v6  ;;  %1606 = vmatprep.mubr.msk.f32.mxu0 %vm62_vm0, %v1757_v6 }
 0x350   :  { %v1566_v40 = vpop.f32.mrf.mxu1  ;;  %v1580_v41 = vpop.f32.mrf.mxu0 }
 0x351   :  { %880 = vst.msk [vmem:[#allocation8 + $0x48] sm:$0xff] %vm62_vm0, %v1566_v40  ;;  %1042 = vst.msk [vmem:[#allocation8 + $0x58] sm:$0xff] %vm62_vm0, %v1580_v41 }
 0x352   :  { %v869_v42 = vpop.f32.mrf.mxu1  ;;  %v1031_v43 = vpop.f32.mrf.mxu0 }
 0x353   :  { %879 = vst.msk [vmem:[#allocation8 + $0x40] sm:$0xff] %vm62_vm0, %v869_v42  ;;  %1041 = vst.msk [vmem:[#allocation8 + $0x50] sm:$0xff] %vm62_vm0, %v1031_v43 }
 0x355   :  { %v1587_v44 = vpop.f32.mrf.mxu1  ;;  %v1601_v45 = vpop.f32.mrf.mxu0 }
 0x356   :  { %1588 = vmatprep.subr.msk.mxu1 %vm62_vm0, %v1587_v44  ;;  %1602 = vmatprep.subr.msk.mxu0 %vm62_vm0, %v1601_v45 }
 0x357   :  { %v1112_v46 = vpop.f32.mrf.mxu1  ;;  %1589 = vmatpush3.xpose.msk.msra.mxu1 %vm62_vm0, %v1587_v44  ;;  %v1274_v47 = vpop.f32.mrf.mxu0  ;;  %1603 = vmatpush3.xpose.msk.msra.mxu0 %vm62_vm0, %v1601_v45 }
 0x358   :  { %1590 = vmatprep.subr.msk.mxu1 %vm62_vm0, %v1112_v46  ;;  %1604 = vmatprep.subr.msk.mxu0 %vm62_vm0, %v1274_v47 }
 0x35b   :  { %1591 = vmatpush3.xpose.msk.msra.mxu1 %vm62_vm0, %v1112_v46  ;;  %1605 = vmatpush3.xpose.msk.msra.mxu0 %vm62_vm0, %v1274_v47 }
 0x35e   :  { %1593 = vmatmul.mubr.msk.f32.vlgmr.msra.gmra.mxu1 %vm62_vm0, %v1771_v13  ;;  %1607 = vmatmul.mubr.msk.f32.vlgmr.msra.gmra.mxu0 %vm62_vm0, %v1771_v13 }
 0x41e   :  { %v1594_v48 = vpop.f32.mrf.mxu1  ;;  %v1608_v49 = vpop.f32.mrf.mxu0 }
 0x41f   :  { %1204 = vst.msk [vmem:[#allocation8 + $0x68] sm:$0xff] %vm62_vm0, %v1594_v48  ;;  %1366 = vst.msk [vmem:[#allocation8 + $0x78] sm:$0xff] %vm62_vm0, %v1608_v49 }
 0x420   :  { %v1193_v50 = vpop.f32.mrf.mxu1  ;;  %v1355_v51 = vpop.f32.mrf.mxu0 }
 0x421   :  { %1203 = vst.msk [vmem:[#allocation8 + $0x60] sm:$0xff] %vm62_vm0, %v1193_v50  ;;  %1365 = vst.msk [vmem:[#allocation8 + $0x70] sm:$0xff] %vm62_vm0, %v1355_v51 }
 0x422   :  { %1686 = shalt.err (!%p1683_p5)
}
 0x423   :  { %1378 = dma.vmem_to_hbm [thread:$0]  %s1373_s2, 2048, %s1874_s3, [#allocation4], %s1703_s17, %s1703_s17, %s1704_s18  }
 0x424   :  { %1699 = dma.done.wait [#allocation4], 2048  }
 0x425   :  { %1700 = vsyncadd [#allocation4], 4294965248 }
 0x426   :  { %1382 = vsyncpa [#allocation3], 1 }
 0x427   :  { %1383 = vsyncpa [#allocation6], 1 }
 0x428   :  { %1384 = vsyncpa [#allocation4], 1 }

</bundles_post_ra>
